<compile_context>
chip_gen: v7x
topology: tpu7x:2x2x1
jax: 0.10.0
libtpu: 0.0.40
codegen_flags: <defaults>
</compile_context>

<pallas_src>
import jax
import jax.numpy as jnp
from jax import lax
from jax.experimental import pallas as pl
from jax.experimental.pallas import tpu as pltpu


def _round_up(x, m):
    return (x + m - 1) // m * m


def _self_attn_kernel(joint_ref,            # (TB, L, E)    bf16
                      d_ref,                # (TB, L, L)    f32  (delta pre-reduced)
                      rmask_ref,            # (TB, L, 1)    f32
                      cmask_ref,            # (TB, 1, L)    f32
                      wq_ref, wk_ref, wv_ref,   # (E, OUTP)  bf16 (W.T, zero-padded)
                      out_ref):             # (TB, L, OUTP) f32
    TB, L, E = joint_ref.shape
    OUTP = wq_ref.shape[-1]

    # Q/K/V projections on fused rows: one (TB*L, E) @ (E, OUTP) dot per projection.
    x = joint_ref[...].reshape(TB * L, E)
    q = jnp.dot(x, wq_ref[...], preferred_element_type=jnp.float32).reshape(TB, L, OUTP)
    k = jnp.dot(x, wk_ref[...], preferred_element_type=jnp.float32).reshape(TB, L, OUTP)
    v = jnp.dot(x, wv_ref[...], preferred_element_type=jnp.float32).reshape(TB, L, OUTP)

    # logits = Q @ K^T + d  (batched, contract on last dims -> no K transpose copy).
    logits = lax.dot_general(
        q.astype(jnp.bfloat16), k.astype(jnp.bfloat16),
        dimension_numbers=(((2,), (2,)), ((0,), (0,))),
        preferred_element_type=jnp.float32) + d_ref[...]

    # Softmax over the FULL row (mask applied afterwards, matching the torch module).
    m = jnp.max(logits, axis=-1, keepdims=True)
    e = jnp.exp(logits - m)
    s = jnp.sum(e, axis=-1, keepdims=True)
    attn = e * pl.reciprocal(s, approx=True)

    # traj_len x traj_len square mask from two 1-D validity vectors (broadcast mul).
    attn = attn * (rmask_ref[...] * cmask_ref[...])

    out = lax.dot_general(
        attn.astype(jnp.bfloat16), v.astype(jnp.bfloat16),
        dimension_numbers=(((2,), (1,)), ((0,), (0,))),
        preferred_element_type=jnp.float32)
    out_ref[...] = out.astype(out_ref.dtype)


def _pick_batch_tile(B, L, E, OUTP):
    """Fill the MXU M dim (aim TB*L >= 256) while keeping the double-buffered
    per-step I/O footprint well under the smallest scoped-VMEM default (16 MiB
    on v5e) and comfortably inside v7x's 64 MiB physical VMEM."""
    lp, ep, op = _round_up(L, 128), _round_up(E, 128), _round_up(OUTP, 128)

    def footprint(tb):
        d_b = tb * _round_up(L, 8) * lp * 4          # f32 d tile
        x_b = tb * _round_up(L, 16) * ep * 2         # bf16 joint tile
        o_b = tb * _round_up(L, 8) * op * 4          # f32 output tile
        m_b = tb * _round_up(L, 8) * 128 * 4 + tb * 8 * lp * 4   # masks
        return 2 * (d_b + x_b + o_b + m_b)           # x2: double buffering

    tb = max(1, min(B, -(-256 // L)))                # ceil(256 / L), capped at B
    while tb > 1 and footprint(tb) > 12 * 1024 * 1024:
        tb -= 1
    while B % tb:                                    # must evenly divide the batch
        tb -= 1
    return tb


def _vmem_limit_bytes():
    """Explicit VMEM budget; leaves ~16 MiB headroom (v7x has only 64 MiB physical)."""
    try:
        cap = pltpu.get_tpu_info().vmem_capacity_bytes
    except Exception:
        return None                                  # unknown part: keep defaults
    if cap < 64 * 1024 * 1024:
        return None
    return int(min(96 * 1024 * 1024, cap - 16 * 1024 * 1024))


@jax.jit
def self_attn_pallas(joint, delta, traj_len, wq_t, wk_t, wv_t):
    """joint: (B, L, E) f32; delta: (B, L, L, K) f32; traj_len: (B,) int32.
       wq_t/wk_t/wv_t: (E, OUT) f32 (already W.T).  Returns (B, L, OUT) f32."""
    B, L, E = joint.shape
    OUT = wq_t.shape[-1]
    OUTP = _round_up(OUT, 128)                       # lane-dense output stores
    TB = _pick_batch_tile(B, L, E, OUTP)

    # ---- cheap wrapper-side prep (fused by XLA around the pallas_call) --------
    d = jnp.sum(delta, axis=-1).astype(jnp.float32)                     # (B, L, L)
    pos = jnp.arange(L, dtype=jnp.int32)
    valid = (pos[None, :] < traj_len[:, None]).astype(jnp.float32)      # (B, L)
    rmask = valid[:, :, None]                                           # (B, L, 1)
    cmask = valid[:, None, :]                                           # (B, 1, L)

    x_bf16 = joint.astype(jnp.bfloat16)
    pad = ((0, 0), (0, OUTP - OUT))                  # zero-pad extra output channels
    wq = jnp.pad(wq_t, pad).astype(jnp.bfloat16)
    wk = jnp.pad(wk_t, pad).astype(jnp.bfloat16)
    wv = jnp.pad(wv_t, pad).astype(jnp.bfloat16)

    grid = (B // TB,)
    in_specs = [
        pl.BlockSpec((TB, L, E), lambda b: (b, 0, 0)),
        pl.BlockSpec((TB, L, L), lambda b: (b, 0, 0)),
        pl.BlockSpec((TB, L, 1), lambda b: (b, 0, 0)),
        pl.BlockSpec((TB, 1, L), lambda b: (b, 0, 0)),
        # Weights are grid-invariant.
        # TODO(synk): on a VMEM-tight v7x config, add pipeline_mode=pl.Buffered(1)
        # to the three weight specs to drop their second pipeline buffer.
        pl.BlockSpec((E, OUTP), lambda b: (0, 0)),
        pl.BlockSpec((E, OUTP), lambda b: (0, 0)),
        pl.BlockSpec((E, OUTP), lambda b: (0, 0)),
    ]
    out_specs = pl.BlockSpec((TB, L, OUTP), lambda b: (b, 0, 0))

    out = pl.pallas_call(
        _self_attn_kernel,
        out_shape=jax.ShapeDtypeStruct((B, L, OUTP), jnp.float32),
        grid=grid,
        in_specs=in_specs,
        out_specs=out_specs,
        compiler_params=pltpu.CompilerParams(
            dimension_semantics=("parallel",),       # batch axis: megacore-shardable
            vmem_limit_bytes=_vmem_limit_bytes()),
    )(x_bf16, d, rmask, cmask, wq, wk, wv)

    return out[:, :, :OUT]


def self_attn_reference(joint, delta, traj_len, wq_t, wk_t, wv_t):
    """Pure-f32 JAX reference mirroring the PyTorch forward."""
    d = jnp.sum(delta, axis=-1)
    B, L, _ = d.shape
    pos = jnp.arange(L)
    tl = traj_len[:, None, None]
    mask = ((pos[None, :, None] < tl) & (pos[None, None, :] < tl)).astype(jnp.float32)
    q = joint @ wq_t
    k = joint @ wk_t
    v = joint @ wv_t
    attn = jnp.einsum("bld,bmd->blm", q, k) + d
    attn = jax.nn.softmax(attn, axis=-1) * mask
    return jnp.einsum("blm,bmd->bld", attn, v)


def self_attn_reference_matched(joint, delta, traj_len, wq_t, wk_t, wv_t):
    """Same math with the kernel's bf16-operand / f32-accumulate mixed precision."""
    d = jnp.sum(delta, axis=-1)
    B, L, _ = d.shape
    pos = jnp.arange(L)
    tl = traj_len[:, None, None]
    mask = ((pos[None, :, None] < tl) & (pos[None, None, :] < tl)).astype(jnp.float32)
    x = joint.astype(jnp.bfloat16)
    q = jnp.einsum("ble,eo->blo", x, wq_t.astype(jnp.bfloat16),
                   preferred_element_type=jnp.float32)
    k = jnp.einsum("ble,eo->blo", x, wk_t.astype(jnp.bfloat16),
                   preferred_element_type=jnp.float32)
    v = jnp.einsum("ble,eo->blo", x, wv_t.astype(jnp.bfloat16),
                   preferred_element_type=jnp.float32)
    attn = jnp.einsum("bld,bmd->blm", q.astype(jnp.bfloat16), k.astype(jnp.bfloat16),
                      preferred_element_type=jnp.float32) + d
    attn = jax.nn.softmax(attn, axis=-1) * mask
    return jnp.einsum("blm,bmd->bld", attn.astype(jnp.bfloat16),
                      v.astype(jnp.bfloat16), preferred_element_type=jnp.float32)


if __name__ == "__main__":
    # Small, deterministic shapes.
    B, L, E, OUT, K = 2, 8, 32, 32, 4

    key = jax.random.PRNGKey(0)
    k1, k2, k3, k4, k5 = jax.random.split(key, 5)

    joint = jax.random.normal(k1, (B, L, E), dtype=jnp.float32)
    delta = jax.random.normal(k2, (B, L, L, K), dtype=jnp.float32)
    traj_len = jnp.array([L, L // 2], dtype=jnp.int32)

    # nn.Linear(E, OUT, bias=False).weight is (OUT, E); we store W.T = (E, OUT).
    bound = 1.0 / (E ** 0.5)
    wq_t = jax.random.uniform(k3, (E, OUT), jnp.float32, -bound, bound)
    wk_t = jax.random.uniform(k4, (E, OUT), jnp.float32, -bound, bound)
    wv_t = jax.random.uniform(k5, (E, OUT), jnp.float32, -bound, bound)

    out = jax.block_until_ready(
        self_attn_pallas(joint, delta, traj_len, wq_t, wk_t, wv_t))
    assert out.shape == (B, L, OUT)

    # Tight parity check against a precision-matched (bf16-operand) reference.
    ref_matched = self_attn_reference_matched(joint, delta, traj_len, wq_t, wk_t, wv_t)
    assert jnp.allclose(out, ref_matched, atol=1e-2, rtol=1e-2), \
        "mismatch vs precision-matched reference"

    # Sanity check against the pure-f32 reference (bf16 MXU operands => looser tol).
    ref_f32 = self_attn_reference(joint, delta, traj_len, wq_t, wk_t, wv_t)
    assert jnp.allclose(out, ref_f32, atol=5e-2, rtol=5e-2), \
        "mismatch vs f32 reference"

    print("KERNEL_OK")
</pallas_src>

<mosaic_0001>
module attributes {stable_mosaic.version = 11 : i64} {
  func.func @_self_attn_kernel(%arg0: i32, %arg1: memref<2x8x32xbf16, #tpu.memory_space<vmem>>, %arg2: memref<2x8x8xf32, #tpu.memory_space<vmem>>, %arg3: memref<2x8x1xf32, #tpu.memory_space<vmem>>, %arg4: memref<2x1x8xf32, #tpu.memory_space<vmem>>, %arg5: memref<32x128xbf16, #tpu.memory_space<vmem>>, %arg6: memref<32x128xbf16, #tpu.memory_space<vmem>>, %arg7: memref<32x128xbf16, #tpu.memory_space<vmem>>, %arg8: memref<2x8x128xf32, #tpu.memory_space<vmem>>) attributes {dimension_semantics = [#tpu.dimension_semantics<parallel>], iteration_bounds = array<i64: 1>, scalar_prefetch = 0 : i64, scratch_operands = 0 : i64, tpu.core_type = #tpu.core_type<tc>, window_params = [{transform_indices = @transform_0, window_bounds = array<i64: 2, 8, 32>}, {transform_indices = @transform_1, window_bounds = array<i64: 2, 8, 8>}, {transform_indices = @transform_2, window_bounds = array<i64: 2, 8, 1>}, {transform_indices = @transform_3, window_bounds = array<i64: 2, 1, 8>}, {pipeline_mode = #tpu.pipeline_mode<synchronous>, transform_indices = @transform_4, window_bounds = array<i64: 32, 128>}, {pipeline_mode = #tpu.pipeline_mode<synchronous>, transform_indices = @transform_5, window_bounds = array<i64: 32, 128>}, {pipeline_mode = #tpu.pipeline_mode<synchronous>, transform_indices = @transform_6, window_bounds = array<i64: 32, 128>}, {transform_indices = @transform_7, window_bounds = array<i64: 2, 8, 128>}]} {
    %c0 = arith.constant 0 : index
    %c0_0 = arith.constant 0 : index
    %c0_1 = arith.constant 0 : index
    %0 = vector.load %arg1[%c0, %c0_0, %c0_1] : memref<2x8x32xbf16, #tpu.memory_space<vmem>>, vector<2x8x32xbf16>
    %1 = vector.shape_cast %0 : vector<2x8x32xbf16> to vector<16x32xbf16>
    %c0_2 = arith.constant 0 : index
    %c0_3 = arith.constant 0 : index
    %2 = vector.load %arg5[%c0_2, %c0_3] : memref<32x128xbf16, #tpu.memory_space<vmem>>, vector<32x128xbf16>
    %cst = arith.constant dense<0.000000e+00> : vector<16x128xf32>
    %3 = tpu.matmul %1, %2, %cst {dimension_numbers = #tpu.dot_dimension_numbers<[1], [0], [0], [1], [0, 0, 1, 1], [], []>} : vector<16x32xbf16>, vector<32x128xbf16>, vector<16x128xf32> -> vector<16x128xf32>
    %4 = vector.shape_cast %3 : vector<16x128xf32> to vector<2x8x128xf32>
    %c0_4 = arith.constant 0 : index
    %c0_5 = arith.constant 0 : index
    %5 = vector.load %arg6[%c0_4, %c0_5] : memref<32x128xbf16, #tpu.memory_space<vmem>>, vector<32x128xbf16>
    %cst_6 = arith.constant dense<0.000000e+00> : vector<16x128xf32>
    %6 = tpu.matmul %1, %5, %cst_6 {dimension_numbers = #tpu.dot_dimension_numbers<[1], [0], [0], [1], [0, 0, 1, 1], [], []>} : vector<16x32xbf16>, vector<32x128xbf16>, vector<16x128xf32> -> vector<16x128xf32>
    %7 = vector.shape_cast %6 : vector<16x128xf32> to vector<2x8x128xf32>
    %c0_7 = arith.constant 0 : index
    %c0_8 = arith.constant 0 : index
    %8 = vector.load %arg7[%c0_7, %c0_8] : memref<32x128xbf16, #tpu.memory_space<vmem>>, vector<32x128xbf16>
    %cst_9 = arith.constant dense<0.000000e+00> : vector<16x128xf32>
    %9 = tpu.matmul %1, %8, %cst_9 {dimension_numbers = #tpu.dot_dimension_numbers<[1], [0], [0], [1], [0, 0, 1, 1], [], []>} : vector<16x32xbf16>, vector<32x128xbf16>, vector<16x128xf32> -> vector<16x128xf32>
    %10 = vector.shape_cast %9 : vector<16x128xf32> to vector<2x8x128xf32>
    %11 = arith.truncf %4 : vector<2x8x128xf32> to vector<2x8x128xbf16>
    %12 = arith.truncf %7 : vector<2x8x128xf32> to vector<2x8x128xbf16>
    %cst_10 = arith.constant dense<0.000000e+00> : vector<2x8x8xf32>
    %13 = tpu.matmul %11, %12, %cst_10 {dimension_numbers = #tpu.dot_dimension_numbers<[2], [2], [1], [1], [0, 0, 0, 1, 1, 1], [0], [0]>} : vector<2x8x128xbf16>, vector<2x8x128xbf16>, vector<2x8x8xf32> -> vector<2x8x8xf32>
    %c0_11 = arith.constant 0 : index
    %c0_12 = arith.constant 0 : index
    %c0_13 = arith.constant 0 : index
    %14 = vector.load %arg2[%c0_11, %c0_12, %c0_13] : memref<2x8x8xf32, #tpu.memory_space<vmem>>, vector<2x8x8xf32>
    %15 = arith.addf %13, %14 : vector<2x8x8xf32>
    %cst_14 = arith.constant dense<0xFF800000> : vector<2x8xf32>
    %16 = vector.multi_reduction <maximumf>, %15, %cst_14 [2] : vector<2x8x8xf32> to vector<2x8xf32>
    %17 = vector.shape_cast %16 : vector<2x8xf32> to vector<2x8x1xf32>
    %18 = vector.broadcast %17 : vector<2x8x1xf32> to vector<2x8x8xf32>
    %19 = arith.subf %15, %18 : vector<2x8x8xf32>
    %20 = math.exp %19 : vector<2x8x8xf32>
    %cst_15 = arith.constant dense<0.000000e+00> : vector<2x8xf32>
    %21 = vector.multi_reduction <add>, %20, %cst_15 [2] : vector<2x8x8xf32> to vector<2x8xf32>
    %22 = vector.shape_cast %21 : vector<2x8xf32> to vector<2x8x1xf32>
    %23 = tpu.reciprocal %22 {approx = true} : vector<2x8x1xf32> -> vector<2x8x1xf32>
    %24 = vector.broadcast %23 : vector<2x8x1xf32> to vector<2x8x8xf32>
    %25 = arith.mulf %20, %24 : vector<2x8x8xf32>
    %c0_16 = arith.constant 0 : index
    %c0_17 = arith.constant 0 : index
    %c0_18 = arith.constant 0 : index
    %26 = vector.load %arg3[%c0_16, %c0_17, %c0_18] : memref<2x8x1xf32, #tpu.memory_space<vmem>>, vector<2x8x1xf32>
    %c0_19 = arith.constant 0 : index
    %c0_20 = arith.constant 0 : index
    %c0_21 = arith.constant 0 : index
    %27 = vector.load %arg4[%c0_19, %c0_20, %c0_21] : memref<2x1x8xf32, #tpu.memory_space<vmem>>, vector<2x1x8xf32>
    %28 = vector.broadcast %26 : vector<2x8x1xf32> to vector<2x8x8xf32>
    %29 = vector.broadcast %27 : vector<2x1x8xf32> to vector<2x8x8xf32>
    %30 = arith.mulf %28, %29 : vector<2x8x8xf32>
    %31 = arith.mulf %25, %30 : vector<2x8x8xf32>
    %32 = arith.truncf %31 : vector<2x8x8xf32> to vector<2x8x8xbf16>
    %33 = arith.truncf %10 : vector<2x8x128xf32> to vector<2x8x128xbf16>
    %cst_22 = arith.constant dense<0.000000e+00> : vector<2x8x128xf32>
    %34 = tpu.matmul %32, %33, %cst_22 {dimension_numbers = #tpu.dot_dimension_numbers<[2], [1], [1], [2], [0, 0, 0, 1, 1, 2], [0], [0]>} : vector<2x8x8xbf16>, vector<2x8x128xbf16>, vector<2x8x128xf32> -> vector<2x8x128xf32>
    %c0_23 = arith.constant 0 : index
    %c0_24 = arith.constant 0 : index
    %c0_25 = arith.constant 0 : index
    %35 = vector.load %arg8[%c0_23, %c0_24, %c0_25] : memref<2x8x128xf32, #tpu.memory_space<vmem>>, vector<2x8x128xf32>
    tpu.vector_store %arg8[%c0_23, %c0_24, %c0_25], %34 {strides = array<i32>} : memref<2x8x128xf32, #tpu.memory_space<vmem>>, vector<2x8x128xf32>,
    return
  }
  func.func @transform_0(%arg0: i32) -> (i32, i32, i32) {
    %c0_i32 = arith.constant 0 : i32
    %c0_i32_0 = arith.constant 0 : i32
    %c0_i32_1 = arith.constant 0 : i32
    return %arg0, %c0_i32, %c0_i32_0 : i32, i32, i32
  }
  func.func @transform_1(%arg0: i32) -> (i32, i32, i32) {
    %c0_i32 = arith.constant 0 : i32
    %c0_i32_0 = arith.constant 0 : i32
    %c0_i32_1 = arith.constant 0 : i32
    return %arg0, %c0_i32, %c0_i32_0 : i32, i32, i32
  }
  func.func @transform_2(%arg0: i32) -> (i32, i32, i32) {
    %c0_i32 = arith.constant 0 : i32
    %c0_i32_0 = arith.constant 0 : i32
    %c0_i32_1 = arith.constant 0 : i32
    return %arg0, %c0_i32, %c0_i32_0 : i32, i32, i32
  }
  func.func @transform_3(%arg0: i32) -> (i32, i32, i32) {
    %c0_i32 = arith.constant 0 : i32
    %c0_i32_0 = arith.constant 0 : i32
    %c0_i32_1 = arith.constant 0 : i32
    return %arg0, %c0_i32, %c0_i32_0 : i32, i32, i32
  }
  func.func @transform_4(%arg0: i32) -> (i32, i32) {
    %c0_i32 = arith.constant 0 : i32
    %c0_i32_0 = arith.constant 0 : i32
    %c0_i32_1 = arith.constant 0 : i32
    return %c0_i32, %c0_i32_0 : i32, i32
  }
  func.func @transform_5(%arg0: i32) -> (i32, i32) {
    %c0_i32 = arith.constant 0 : i32
    %c0_i32_0 = arith.constant 0 : i32
    %c0_i32_1 = arith.constant 0 : i32
    return %c0_i32, %c0_i32_0 : i32, i32
  }
  func.func @transform_6(%arg0: i32) -> (i32, i32) {
    %c0_i32 = arith.constant 0 : i32
    %c0_i32_0 = arith.constant 0 : i32
    %c0_i32_1 = arith.constant 0 : i32
    return %c0_i32, %c0_i32_0 : i32, i32
  }
  func.func @transform_7(%arg0: i32) -> (i32, i32, i32) {
    %c0_i32 = arith.constant 0 : i32
    %c0_i32_0 = arith.constant 0 : i32
    %c0_i32_1 = arith.constant 0 : i32
    return %arg0, %c0_i32, %c0_i32_0 : i32, i32, i32
  }
}

</mosaic_0001>

<bundles_post_ra>
// kernel: self_attn_pallas.1
= control target key start
LH: loop header
LB: loop body
LE: loop exit
PB: predicated region body
PF: predicated region fallthrough
CT: control target
= control target key end

     0   :  { %v590_v1 = vmov 0.0   ;;  %vm591_vm0 = vmmov 0   ;;  %vm51_vm1 = vcmask 261120   ;;  %s700_s0 = inlined_call_operand.vmem [shape: bf16[2,8,32], index: 0, kind: input, shape index: {}]   ;;  %s701_s1 = inlined_call_operand.vmem [shape: f32[2,8,8], index: 1, kind: input, shape index: {}]   ;;  %s702_s2 = inlined_call_operand.vmem [shape: f32[2,8,1], index: 2, kind: input, shape index: {}]   ;;  %s703_s3 = inlined_call_operand.vmem [shape: f32[2,1,8], index: 3, kind: input, shape index: {}]   ;;  %s704_s4 = inlined_call_operand.vmem [shape: bf16[32,128], index: 4, kind: input, shape index: {}]   ;;  %s705_s5 = inlined_call_operand.vmem [shape: bf16[32,128], index: 5, kind: input, shape index: {}]   ;;  %s706_s6 = inlined_call_operand.vmem [shape: bf16[32,128], index: 6, kind: input, shape index: {}]   ;;  %s707_s7 = inlined_call_operand.hbm [shape: f32[2,8,128], index: 7, kind: output, shape index: {}]  }
   0x1   :  { %v551_v0 = vld [vmem:[%s705_s5] sm:$0xff]   ;;  %503 = vmatprep.subr.bf16.mxu1 %v590_v1  ;;  %495 = vmatprep.subr.bf16.mxu0 %v590_v1  ;;  %v552_v2 = vld [vmem:[%s705_s5 + $0x8] sm:$0xff]  }
   0x2   :  { %504 = vmatpush3.bf16.msra.mxu1 %v551_v0  ;;  %v553_v3 = vld [vmem:[%s704_s4] sm:$0xff]   ;;  %507 = vmatprep.mubr.msk.bf16.mxu1 %vm591_vm0, %v590_v1  ;;  %v555_v4 = vld [vmem:[%s704_s4 + $0x8] sm:$0xff]  }
   0x3   :  { %505 = vmatprep.subr.bf16.mxu1 %v590_v1  ;;  %499 = vmatprep.mubr.msk.bf16.mxu0 %vm591_vm0, %v590_v1  ;;  %v554_v5 = vld [vmem:[%s700_s0] sm:$0xff]  }
   0x4   :  { %496 = vmatpush3.bf16.msra.mxu0 %v553_v3 }
   0x5   :  { %497 = vmatprep.subr.bf16.mxu0 %v590_v1 }
   0x6   :  { %506 = vmatpush3.bf16.msra.mxu1 %v552_v2 }
   0x7   :  { %519 = vmatprep.subr.bf16.mxu1 %v590_v1 }
   0x8   :  { %12 = vsyncpa [#allocation3], 0  ;;  %498 = vmatpush3.bf16.msra.mxu0 %v555_v4  ;;  %v556_v6 = vld [vmem:[%s706_s6] sm:$0xff]   ;;  %v557_v7 = vld [vmem:[%s706_s6 + $0x8] sm:$0xff]   ;;  %vm356_vm2 = vcmask 1043456   ;;  %vm296_vm3 = vcmask 64512  }
   0x9   :  { %508 = vmatmul.mubr.msk.bf16.vlgmr.msra.gmra.mrb[0].mxu1 %vm51_vm1, %v554_v5  ;;  %511 = vmatprep.subr.bf16.mxu0 %v590_v1  ;;  %v214_v28 = vld [vmem:[%s701_s1] sm:$0xff]  ;;  %v215_v30 = vld [vmem:[%s701_s1 + $0x8] sm:$0xff]  ;;  %v592_v43 = vmov 0  }
   0xa   :  { %521 = vmatprep.mubr.msk.bf16.mxu1 %vm591_vm0, %v590_v1  ;;  %v319_v42 = vld [vmem:[%s702_s2] sm:$0xff]  ;;  %549 = vset.pattern.permute.xlu0 %v592_v43  ;;  %v320_v54 = vld [vmem:[%s702_s2 + $0x8] sm:$0xff]  ;;  %s593_s2 = smov [#allocation2]  }
   0xb   :  { %500 = vmatmul.mubr.msk.bf16.vlgmr.msra.gmra.mrb[0].mxu0 %vm51_vm1, %v554_v5  ;;  %550 = vset.pattern.permute.xlu1 %v592_v43  ;;  %v474_v57 = vld [vmem:[%s703_s3] ss:$0 sm:$0xff]  ;;  %v475_v61 = vld [vmem:[%s703_s3 + $0x1] ss:$0 sm:$0xff]  ;;  %s453_s22 = sshll.u32 %s593_s2, 4  ;;  %s454_s22 = int_to_ptr.vmem [resolvable:$true] %s453_s22 }
   0xc   :  { %512 = vmatpush3.bf16.msra.mxu0 %v556_v6  ;;  %515 = vmatprep.mubr.msk.bf16.mxu0 %vm591_vm0, %v590_v1  ;;  %s566_s3 = scalar_lea.vmem %s454_s22, 256  ;;  %p571_p1 = scmp.lt.s32.totalorder %s454_s22, %s454_s22 }
   0xd   :  { %513 = vmatprep.subr.bf16.mxu0 %v590_v1  ;;  %p567_p0 = scmp.ne.s32.totalorder %s454_s22, %s566_s3  ;;  %p572_p2 = scmp.lt.s32.totalorder %s566_s3, %s566_s3 }
   0xf   :  { %p573_p3 = por %p572_p2, %p571_p1 }
  0x10   :  { %514 = vmatpush3.bf16.msra.mxu0 %v557_v7 }
  0x11   :  { %525 = vmatprep.subr.bf16.mxu0 %v590_v1  ;;  %p574_p4 = pnand %p573_p3, %p567_p0 }
  0x13   :  { %516 = vmatmul.mubr.msk.bf16.vlgmr.msra.gmra.mrb[4].mxu0 %vm51_vm1, %v554_v5 }
  0x14   :  { %527 = vmatprep.mubr.msk.bf16.mxu0 %vm591_vm0, %v590_v1 }
  0xdc   :  { %v146_v8 = vpop.f32.mrb[0].mxu1 }
  0xdd   :  { %v212_v9 = vpack.c.bf16 %v146_v8, %v146_v8  ;;  %v509_v10 = vpop.f32.mrb[1].mxu1 }
  0xde   :  { %v149_v11 = vpop.f32.mrb[2].mxu1  ;;  %v89_v12 = vpop.f32.mrb[0].mxu0 }
  0xdf   :  { %v213_v13 = vpack.c.bf16 %v149_v11, %v149_v11  ;;  %v510_v14 = vpop.f32.mrb[3].mxu1  ;;  %520 = vmatpush3.bf16.xpose.msra.mxu1 %v212_v9  ;;  %v501_v15 = vpop.f32.mrb[1].mxu0  ;;  %v210_v18 = vpack.c.bf16 %v89_v12, %v89_v12 }
  0xe0   :  { %v92_v16 = vpop.f32.mrb[2].mxu0  ;;  %531 = vmatprep.subr.bf16.mxu1 %v590_v1 }
  0xe1   :  { %526 = vmatpush3.bf16.xpose.msra.mxu0 %v213_v13  ;;  %v502_v17 = vpop.f32.mrb[3].mxu0  ;;  %v211_v19 = vpack.c.bf16 %v92_v16, %v92_v16 }
  0xe2   :  { %537 = vmatprep.subr.bf16.mxu0 %v590_v1 }
  0xe6   :  { %522 = vmatmul.mubr.bf16.vlgmr.msra.gmra.mrb[4].mxu1 %v210_v18  ;;  %v203_v20 = vpop.f32.mrb[4].mxu0 }
  0xe7   :  { %v351_v21 = vpack.c.bf16 %v203_v20, %v203_v20  ;;  %v517_v22 = vpop.f32.mrb[5].mxu0  ;;  %533 = vmatprep.mubr.msk.bf16.mxu1 %vm591_vm0, %v590_v1 }
  0xe8   :  { %528 = vmatmul.mubr.bf16.vlgmr.msra.gmra.mrb[8].mxu0 %v211_v19  ;;  %v206_v23 = vpop.f32.mrb[6].mxu0 }
  0xe9   :  { %v358_v24 = vsel %vm356_vm2, %v351_v21, 0  ;;  %v352_v25 = vpack.c.bf16 %v206_v23, %v206_v23  ;;  %v518_v26 = vpop.f32.mrb[7].mxu0  ;;  %539 = vmatprep.mubr.msk.bf16.mxu0 %vm591_vm0, %v590_v1 }
  0xea   :  { %532 = vmatpush3.bf16.msra.mxu1 %v358_v24 }
  0xeb   :  { %v404_v27 = vsel %vm356_vm2, %v352_v25, 0 }
  0xec   :  { %538 = vmatpush3.bf16.msra.mxu0 %v404_v27 }
 0x1b9   :  { %v250_v29 = vpop.f32.mrb[4].mxu1 }
 0x1ba   :  { %v251_v31 = vadd.f32 %v250_v29, %v214_v28  ;;  %v523_v32 = vpop.f32.mrb[5].mxu1 }
 0x1bb   :  { %v253_v33 = vpop.f32.mrb[6].mxu1  ;;  %v290_v34 = vpop.f32.mrb[8].mxu0 }
 0x1bc   :  { %v291_v35 = vadd.f32 %v290_v34, %v215_v30  ;;  %v524_v36 = vpop.f32.mrb[7].mxu1  ;;  %v529_v37 = vpop.f32.mrb[9].mxu0  ;;  %v297_v38 = vsel %vm296_vm3, %v251_v31, -inf }
 0x1bd   :  { %298 = vmax.xlane.f32.xlu0 %v297_v38  ;;  %v293_v39 = vpop.f32.mrb[10].mxu0 }
 0x1be   :  { %v530_v40 = vpop.f32.mrb[11].mxu0  ;;  %v300_v41 = vsel %vm296_vm3, %v291_v35, -inf }
 0x1c1   :  { %301 = vmax.xlane.f32.xlu0 %v300_v41 }
 0x1d7   :  { %325 = vperm.xlu0 %549, %v319_v42  }
 0x24a   :  { %v299_v44 = vpop.xlane.xlu0 %298 }
 0x24b   :  { %v303_v45 = vsub.f32 %v251_v31, %v299_v44 }
 0x24d   :  { %v305_v46 = vmul.f32 1.442695, %v303_v45 }
 0x24e   :  { %v302_v47 = vpop.xlane.xlu0 %301 }
 0x24f   :  { %558 = vpow2.f32 %v305_v46  ;;  %v304_v48 = vsub.f32 %v291_v35, %v302_v47 }
 0x251   :  { %v307_v49 = vmul.f32 1.442695, %v304_v48 }
 0x253   :  { %560 = vpow2.f32 %v307_v49 }
 0x256   :  { %v326_v58 = vpop.permute.xlu0 %325 }
 0x257   :  { %v345_v59 = vmul.f32 %v474_v57, %v326_v58 }
 0x259   :  { %v559_v50 = vpop.eup %558 }
 0x25a   :  { %v309_v51 = vsel %vm296_vm3, %v559_v50, 0.0 }
 0x25b   :  { %310 = vadd.xlane.f32.xlu1 %v309_v51 }
 0x25d   :  { %v561_v52 = vpop.eup %560 }
 0x25e   :  { %v312_v53 = vsel %vm296_vm3, %v561_v52, 0.0 }
 0x25f   :  { %313 = vadd.xlane.f32.xlu1 %v312_v53 }
 0x270   :  { %330 = vperm.xlu1 %550, %v320_v54  }
 0x2e8   :  { %v311_v55 = vpop.xlane.xlu1 %310 }
 0x2e9   :  { %562 = vrcp.f32 %v311_v55 }
 0x2ec   :  { %v314_v56 = vpop.xlane.xlu1 %313 }
 0x2ed   :  { %564 = vrcp.f32 %v314_v56 }
 0x2f0   :  { %v331_v62 = vpop.permute.xlu1 %330 }
 0x2f1   :  { %v346_v1 = vmul.f32 %v475_v61, %v331_v62 }
 0x2f3   :  { %v563_v60 = vpop.eup %562 }
 0x2f4   :  { %v317_v63 = vmul.f32 %v563_v60, %v559_v50 }
 0x2f6   :  { %v347_v0 = vmul.f32 %v345_v59, %v317_v63 }
 0x2f7   :  { %v565_v2 = vpop.eup %564 }
 0x2f8   :  { %v349_v3 = vpack.c.bf16 %v347_v0, %v347_v0  ;;  %v318_v4 = vmul.f32 %v565_v2, %v561_v52 }
 0x2fa   :  { %v348_v5 = vmul.f32 %v346_v1, %v318_v4  ;;  %534 = vmatmul.mubr.msk.bf16.vlgmr.msra.gmra.mrb[8].mxu1 %vm296_vm3, %v349_v3 }
 0x2fc   :  { %v350_v6 = vpack.c.bf16 %v348_v5, %v348_v5 }
 0x2fe   :  { %540 = vmatmul.mubr.msk.bf16.vlgmr.msra.gmra.mrb[12].mxu0 %vm296_vm3, %v350_v6 }
 0x3cd   :  { %v394_v7 = vpop.f32.mrb[8].mxu1 }
 0x3ce   :  { %446 = vst [vmem:[#allocation2] sm:$0xff] %v394_v7  ;;  %v535_v8 = vpop.f32.mrb[9].mxu1 }
 0x3cf   :  { %v397_v9 = vpop.f32.mrb[10].mxu1 }
 0x3d0   :  { %v536_v10 = vpop.f32.mrb[11].mxu1 }
 0x3d1   :  { %v440_v11 = vpop.f32.mrb[12].mxu0 }
 0x3d2   :  { %447 = vst [vmem:[#allocation2 + $0x8] sm:$0xff] %v440_v11  ;;  %v541_v12 = vpop.f32.mrb[13].mxu0 }
 0x3d3   :  { %v443_v13 = vpop.f32.mrb[14].mxu0 }
 0x3d4   :  { %577 = shalt.err (!%p574_p4)
}
 0x3d5   :  { %s578_s25 = scalar_lea.hbm %s707_s7, 256 }
 0x3d6   :  { %p579_p5 = scmp.ne.s32.totalorder %s707_s7, %s578_s25  ;;  %p582_p6 = scmp.lt.u32.totalorder %s578_s25, %s707_s7 }
 0x3d8   :  { %p584_p7 = pnand %p582_p6, %p579_p5 }
 0x3da   :  { %587 = shalt.err (!%p584_p7)
}
 0x3db   :  { %s594_s30 = smov 128   ;;  %s595_s8 = smov 8   ;;  %v542_v14 = vpop.f32.mrb[15].mxu0 }
 0x3dc   :  { %459 = dma.vmem_to_hbm [thread:$0]  %s454_s22, 256, %s707_s7, [#allocation3], %s594_s30, %s594_s30, %s595_s8  }
 0x3dd   :  { %588 = dma.done.wait [#allocation3], 256  }
 0x3de   :  { %589 = vsyncadd [#allocation3], 4294967040 }
 0x3df   :  { %463 = vsyncpa [#allocation3], 1 }

</bundles_post_ra>
